<compile_context>
chip_gen: v5e
topology: v5e:2x2
jax: 0.10.0
libtpu: 0.0.40
codegen_flags: <defaults>
</compile_context>

<pallas_src>
import functools

import jax
import jax.numpy as jnp
from jax.experimental import pallas as pl
from jax.experimental.pallas import tpu as pltpu


# --------------------------------------------------------------------------
# Small helpers
# --------------------------------------------------------------------------

def _round_up(x, m):
    return ((x + m - 1) // m) * m


def _choose_tiling(M, max_tile):
    """Pick a row tile <= max_tile. Prefer an exact divisor of M (no padding);
    otherwise pad M up to a multiple of the tile (always a multiple of 8)."""
    for t in (2048, 1024, 512, 256, 128, 64, 32, 16, 8):
        if t <= max_tile and M % t == 0:
            return t, M
    t = min(max_tile, _round_up(M, 8))
    t = max(8, (t // 8) * 8)
    return t, _round_up(M, t)


def _gemm_row_tile(M, K, N):
    # Per-row VMEM bytes: bf16 A row + f32 out row.  A ~4 MiB/tile budget keeps
    # the double-buffered working set (plus the resident bf16 B matrix,
    # <= 8 MiB for the largest layer) well inside every generation's VMEM,
    # including v7x's 64 MiB.
    bytes_per_row = 2 * K + 4 * N
    max_tm = (4 * 1024 * 1024) // max(bytes_per_row, 1)
    max_tm = max(128, min(2048, max_tm))
    if M >= 256:
        max_tm = min(max_tm, M // 2)   # keep >= 2 grid steps (megacore sharding)
    return _choose_tiling(M, max_tm)


def _bn_row_tile(M, C):
    bytes_per_row = 8 * C              # f32 in + f32 out
    max_tm = (2 * 1024 * 1024) // max(bytes_per_row, 1)
    max_tm = max(128, min(2048, max_tm))
    if M >= 256:
        max_tm = min(max_tm, M // 2)
    return _choose_tiling(M, max_tm)


# --------------------------------------------------------------------------
# Pallas kernels
# --------------------------------------------------------------------------

def _gemm_bias_kernel(a_ref, b_ref, bias_ref, o_ref, *stats_refs,
                      fuse_lrelu, slope):
    """One M-tile of y = A @ B + bias, with B fully VMEM-resident.

    Optionally fuses LeakyReLU (non-BN layers) and/or emits per-column
    sum / sum-of-squares of the pre-activation (BN layers)."""
    y = jnp.dot(a_ref[...], b_ref[...], preferred_element_type=jnp.float32)
    y = y + bias_ref[...]

    if stats_refs:
        (stats_ref,) = stats_refs
        n = y.shape[1]
        ssum = jnp.sum(y, axis=0, keepdims=True)          # (1, n)
        ssq = jnp.sum(y * y, axis=0, keepdims=True)       # (1, n)
        row = jax.lax.broadcasted_iota(jnp.int32, (8, n), 0)
        stats_ref[...] = jnp.where(row == 0, ssum,
                                   jnp.where(row == 1, ssq, 0.0))

    if fuse_lrelu:
        y = jnp.where(y >= 0, y, slope * y)
    o_ref[...] = y.astype(o_ref.dtype)


def matmul_bias_fused(a, b, bias, *, fuse_lrelu=False, emit_stats=False,
                      slope=0.2):
    """a: (M, K) bf16, b: (K, N) bf16 (kept resident in VMEM), bias: (1, N) f32.

    Returns (y, stats, M_pad):
      y     : (M_pad, N) f32, rows >= M correspond to zero-padded A rows.
      stats : None, or (8 * grid, N) f32 where per tile row 0 = column sum and
              row 1 = column sum-of-squares of the biased pre-activation.
    """
    M, K = a.shape
    K2, N = b.shape
    assert K == K2
    tm, M_pad = _gemm_row_tile(M, K, N)
    if M_pad != M:
        a = jnp.pad(a, ((0, M_pad - M), (0, 0)))
    grid = (M_pad // tm,)

    out_shape = [jax.ShapeDtypeStruct((M_pad, N), jnp.float32)]
    out_specs = [pl.BlockSpec((tm, N), lambda i: (i, 0))]
    if emit_stats:
        out_shape.append(jax.ShapeDtypeStruct((8 * grid[0], N), jnp.float32))
        out_specs.append(pl.BlockSpec((8, N), lambda i: (i, 0)))

    outs = pl.pallas_call(
        functools.partial(_gemm_bias_kernel, fuse_lrelu=fuse_lrelu, slope=slope),
        out_shape=tuple(out_shape),
        grid_spec=pltpu.PrefetchScalarGridSpec(
            num_scalar_prefetch=0,
            grid=grid,
            in_specs=[
                pl.BlockSpec((tm, K), lambda i: (i, 0)),
                pl.BlockSpec((K, N), lambda i: (0, 0)),   # whole B, VMEM-resident
                pl.BlockSpec((1, N), lambda i: (0, 0)),
            ],
            out_specs=tuple(out_specs),
        ),
        compiler_params=pltpu.CompilerParams(
            dimension_semantics=("parallel",),
            vmem_limit_bytes=48 * 1024 * 1024),
    )(a, b, bias)

    if emit_stats:
        return outs[0], outs[1], M_pad
    return outs[0], None, M_pad


def _bn_lrelu_kernel(y_ref, mean_ref, scale_ref, shift_ref, o_ref, *, slope):
    """o = LeakyReLU((y - mean) * scale + shift)  (fused BN-apply + activation)."""
    z = (y_ref[...] - mean_ref[...]) * scale_ref[...] + shift_ref[...]
    o_ref[...] = jnp.where(z >= 0, z, slope * z)


def bn_lrelu(y, mean, scale, shift, slope=0.2):
    """y: (M, C) f32; mean/scale/shift: (1, C) f32 -> (M, C) f32."""
    M, C = y.shape
    tm, M_pad = _bn_row_tile(M, C)
    if M_pad != M:
        y = jnp.pad(y, ((0, M_pad - M), (0, 0)))
    out = pl.pallas_call(
        functools.partial(_bn_lrelu_kernel, slope=slope),
        out_shape=jax.ShapeDtypeStruct((M_pad, C), jnp.float32),
        grid_spec=pltpu.PrefetchScalarGridSpec(
            num_scalar_prefetch=0,
            grid=(M_pad // tm,),
            in_specs=[pl.BlockSpec((tm, C), lambda i: (i, 0)),
                      pl.BlockSpec((1, C), lambda i: (0, 0)),
                      pl.BlockSpec((1, C), lambda i: (0, 0)),
                      pl.BlockSpec((1, C), lambda i: (0, 0))],
            out_specs=pl.BlockSpec((tm, C), lambda i: (i, 0)),
        ),
        compiler_params=pltpu.CompilerParams(
            dimension_semantics=("parallel",),
            vmem_limit_bytes=48 * 1024 * 1024),
    )(y, mean, scale, shift)
    return out[:M]


# --------------------------------------------------------------------------
# JAX glue: im2col lowering of the convs onto the fused Pallas GEMM
# --------------------------------------------------------------------------

def im2col(x, K, stride, pad):
    """x: (N, H, W, C) -> patches (N*OH*OW, K*K*C), ordered (kh, kw, c)."""
    N, H, W, C = x.shape
    xp = jnp.pad(x, ((0, 0), (pad, pad), (pad, pad), (0, 0)))
    OH = (H + 2 * pad - K) // stride + 1
    OW = (W + 2 * pad - K) // stride + 1
    cols = []
    for kh in range(K):
        for kw in range(K):
            cols.append(xp[:, kh:kh + stride * OH:stride,
                           kw:kw + stride * OW:stride, :])
    patches = jnp.stack(cols, axis=3)  # (N, OH, OW, K*K, C)
    return patches.reshape(N * OH * OW, K * K * C), (N, OH, OW)


def conv2d_gemm(x, w, b, stride, pad, *, fuse_lrelu=False, emit_stats=False):
    """x: NHWC f32; w: PyTorch layout (C_out, C_in, KH, KW) f32; b: (C_out,).

    Returns (y, M, (N, OH, OW), stats):
      y     : (M_pad, N_lane) f32 (possibly row/channel padded; caller slices)
      stats : None, or (col_sum, col_sumsq) over the real M rows, length C_out.
    """
    C_out, C_in, KH, KW = w.shape
    # bf16 operands (f32 accumulation in the kernel); halves A/B HBM traffic.
    patches, (Nb, OH, OW) = im2col(x.astype(jnp.bfloat16), KH, stride, pad)
    M, K = patches.shape
    w_mat = jnp.transpose(w, (2, 3, 1, 0)).reshape(K, C_out).astype(jnp.bfloat16)
    bias = b.reshape(1, C_out).astype(jnp.float32)

    # Lane-dense output for very narrow heads (the final 1-channel conv):
    # zero-pad weights/bias up to 128 output columns; caller slices back.
    N_lane = C_out
    if C_out < 64:
        N_lane = _round_up(C_out, 128)
        w_mat = jnp.pad(w_mat, ((0, 0), (0, N_lane - C_out)))
        bias = jnp.pad(bias, ((0, 0), (0, N_lane - C_out)))

    y, stats_raw, M_pad = matmul_bias_fused(
        patches, w_mat, bias, fuse_lrelu=fuse_lrelu, emit_stats=emit_stats)

    stats = None
    if emit_stats:
        G = stats_raw.shape[0] // 8
        st = stats_raw.reshape(G, 8, N_lane)
        csum = jnp.sum(st[:, 0, :], axis=0)
        csq = jnp.sum(st[:, 1, :], axis=0)
        pad_rows = M_pad - M
        if pad_rows:
            # A zero-padded patch row yields exactly `bias` per column.
            csum = csum - pad_rows * bias[0]
            csq = csq - pad_rows * (bias[0] * bias[0])
        stats = (csum[:C_out], csq[:C_out])
    return y, M, (Nb, OH, OW), stats


# --------------------------------------------------------------------------
# Discriminator parameters + forward
# --------------------------------------------------------------------------

def init_params(key, in_channels=1):
    """Deterministic synthetic init, shapes match the PyTorch module."""
    blocks = [(in_channels, 64, 4, False),
              (64, 128, 4, True),
              (128, 256, 4, True),
              (256, 512, 4, True)]
    params = []
    for (ci, co, k, norm) in blocks:
        key, kw, kb = jax.random.split(key, 3)
        layer = {
            "w": 0.05 * jax.random.normal(kw, (co, ci, k, k), jnp.float32),
            "b": 0.01 * jax.random.normal(kb, (co,), jnp.float32),
            "norm": norm,
        }
        if norm:
            layer["gamma"] = jnp.ones((co,), jnp.float32)   # PyTorch BN default
            layer["beta"] = jnp.zeros((co,), jnp.float32)
        params.append(layer)
    key, kw, kb = jax.random.split(key, 3)
    params.append({
        "w": 0.05 * jax.random.normal(kw, (1, 512, 3, 3), jnp.float32),
        "b": 0.01 * jax.random.normal(kb, (1,), jnp.float32),
        "norm": False,
    })
    return params


def discriminator_forward(x_nchw, params):
    # Input/output NCHW (PyTorch convention); internal compute NHWC.
    x = jnp.transpose(x_nchw, (0, 2, 3, 1)).astype(jnp.float32)

    for layer in params[:4]:
        has_bn = layer["norm"]
        C = layer["w"].shape[0]
        y, M, (Nb, OH, OW), stats = conv2d_gemm(
            x, layer["w"], layer["b"], stride=2, pad=1,
            fuse_lrelu=not has_bn, emit_stats=has_bn)
        if has_bn:
            # BatchNorm2d (training mode): batch statistics over (N, H, W),
            # biased variance, eps = 1e-5.
            csum, csq = stats
            mean = csum / M
            var = jnp.maximum(csq / M - mean * mean, 0.0)
            scale = layer["gamma"] * jax.lax.rsqrt(var + 1e-5)
            shift = layer["beta"]
            y = bn_lrelu(y, mean.reshape(1, C), scale.reshape(1, C),
                         shift.reshape(1, C), slope=0.2)
        x = y[:M, :C].reshape(Nb, OH, OW, C)

    # Final Conv2d(512, 1, 3, stride=1, padding=1), no activation.
    last = params[4]
    C = last["w"].shape[0]
    y, M, (Nb, OH, OW), _ = conv2d_gemm(x, last["w"], last["b"],
                                        stride=1, pad=1,
                                        fuse_lrelu=False, emit_stats=False)
    out = y[:M, :C].reshape(Nb, OH, OW, C)
    return jnp.transpose(out, (0, 3, 1, 2))     # back to NCHW


# --------------------------------------------------------------------------

if __name__ == "__main__":
    key = jax.random.PRNGKey(0)
    key, kx = jax.random.split(key)

    # Small shapes: batch=2, channels=1, spatial=32 (module default is 512).
    N, C_in, H, W = 2, 1, 32, 32
    x = jax.random.normal(kx, (N, C_in, H, W), dtype=jnp.float32)

    params = init_params(key, in_channels=C_in)
    out = discriminator_forward(x, params)
    out = jax.block_until_ready(out)

    # Four stride-2 convs: 32 -> 16 -> 8 -> 4 -> 2; final 3x3 s=1 keeps 2x2.
    assert out.shape == (N, 1, 2, 2), out.shape
    assert jnp.all(jnp.isfinite(out))
    print("KERNEL_OK")
</pallas_src>

<mosaic_0001>
module attributes {stable_mosaic.version = 11 : i64} {
  func.func @_gemm_bias_kernel(%arg0: i32, %arg1: memref<256x16xbf16, #tpu.memory_space<vmem>>, %arg2: memref<16x64xbf16, #tpu.memory_space<vmem>>, %arg3: memref<1x64xf32, #tpu.memory_space<vmem>>, %arg4: memref<256x64xf32, #tpu.memory_space<vmem>>) attributes {dimension_semantics = [#tpu.dimension_semantics<parallel>], iteration_bounds = array<i64: 2>, scalar_prefetch = 0 : i64, scratch_operands = 0 : i64, tpu.core_type = #tpu.core_type<tc>, window_params = [{transform_indices = @transform_0, window_bounds = array<i64: 256, 16>}, {pipeline_mode = #tpu.pipeline_mode<synchronous>, transform_indices = @transform_1, window_bounds = array<i64: 16, 64>}, {pipeline_mode = #tpu.pipeline_mode<synchronous>, transform_indices = @transform_2, window_bounds = array<i64: 1, 64>}, {transform_indices = @transform_3, window_bounds = array<i64: 256, 64>}]} {
    %c0 = arith.constant 0 : index
    %c0_0 = arith.constant 0 : index
    %0 = vector.load %arg1[%c0, %c0_0] : memref<256x16xbf16, #tpu.memory_space<vmem>>, vector<256x16xbf16>
    %c0_1 = arith.constant 0 : index
    %c0_2 = arith.constant 0 : index
    %1 = vector.load %arg2[%c0_1, %c0_2] : memref<16x64xbf16, #tpu.memory_space<vmem>>, vector<16x64xbf16>
    %cst = arith.constant dense<0.000000e+00> : vector<256x64xf32>
    %2 = tpu.matmul %0, %1, %cst {dimension_numbers = #tpu.dot_dimension_numbers<[1], [0], [0], [1], [0, 0, 1, 1], [], []>} : vector<256x16xbf16>, vector<16x64xbf16>, vector<256x64xf32> -> vector<256x64xf32>
    %c0_3 = arith.constant 0 : index
    %c0_4 = arith.constant 0 : index
    %3 = vector.load %arg3[%c0_3, %c0_4] : memref<1x64xf32, #tpu.memory_space<vmem>>, vector<1x64xf32>
    %4 = vector.broadcast %3 : vector<1x64xf32> to vector<256x64xf32>
    %5 = arith.addf %2, %4 : vector<256x64xf32>
    %cst_5 = arith.constant 0.000000e+00 : f32
    %6 = vector.broadcast %cst_5 : f32 to vector<256x64xf32>
    %7 = arith.cmpf oge, %5, %6 : vector<256x64xf32>
    %cst_6 = arith.constant 2.000000e-01 : f32
    %8 = vector.broadcast %cst_6 : f32 to vector<256x64xf32>
    %9 = arith.mulf %8, %5 : vector<256x64xf32>
    %10 = arith.select %7, %5, %9 : vector<256x64xi1>, vector<256x64xf32>
    %c0_7 = arith.constant 0 : index
    %c0_8 = arith.constant 0 : index
    %11 = vector.load %arg4[%c0_7, %c0_8] : memref<256x64xf32, #tpu.memory_space<vmem>>, vector<256x64xf32>
    tpu.vector_store %arg4[%c0_7, %c0_8], %10 {strides = array<i32>} : memref<256x64xf32, #tpu.memory_space<vmem>>, vector<256x64xf32>,
    return
  }
  func.func @transform_0(%arg0: i32) -> (i32, i32) {
    %c0_i32 = arith.constant 0 : i32
    %c0_i32_0 = arith.constant 0 : i32
    return %arg0, %c0_i32 : i32, i32
  }
  func.func @transform_1(%arg0: i32) -> (i32, i32) {
    %c0_i32 = arith.constant 0 : i32
    %c0_i32_0 = arith.constant 0 : i32
    %c0_i32_1 = arith.constant 0 : i32
    return %c0_i32, %c0_i32_0 : i32, i32
  }
  func.func @transform_2(%arg0: i32) -> (i32, i32) {
    %c0_i32 = arith.constant 0 : i32
    %c0_i32_0 = arith.constant 0 : i32
    %c0_i32_1 = arith.constant 0 : i32
    return %c0_i32, %c0_i32_0 : i32, i32
  }
  func.func @transform_3(%arg0: i32) -> (i32, i32) {
    %c0_i32 = arith.constant 0 : i32
    %c0_i32_0 = arith.constant 0 : i32
    return %arg0, %c0_i32 : i32, i32
  }
}

</mosaic_0001>

<bundles_post_ra>
// kernel: tpu_custom_call.1
= control target key start
LH: loop header
LB: loop body
LE: loop exit
PB: predicated region body
PF: predicated region fallthrough
CT: control target
= control target key end

     0   :  { %s774_s12 = smov 0   ;;  %s917_s0 = inlined_call_operand.vmem [shape: bf16[512,16], index: 0, kind: input, shape index: {}]   ;;  %s918_s1 = inlined_call_operand.vmem [shape: bf16[16,64], index: 1, kind: input, shape index: {}]   ;;  %s919_s2 = inlined_call_operand.vmem [shape: f32[1,64], index: 2, kind: input, shape index: {}]   ;;  %s920_s3 = inlined_call_operand.vmem [shape: f32[512,64], index: 3, kind: output, shape index: {}]  }
   0x1 LB: > { %s622_s13 = sadd.s32 4294967295, %s752_s12   ;;  %p626_p0 = scmp.ge.s32.totalorder %s752_s12, 1  ;;  %s752_s12 = sphi %s774_s12, %s13_s12  }
   0x2   : > { %p138_p1 = scmp.lt.s32.totalorder %s752_s12, 3 }
   0x4   : > { %p139_p2 = pnand %p626_p0, %p138_p1 }
   0x5   : > { %s627_s16 = sshll.u32 (!%p139_p2), %s622_s13, 5 }
   0x6   : > { %142 = sbr.rel (%p139_p2) target bundleno = 212 (0xd4), region = 32  ;;  %p163_p3 = scmp.lt.s32.totalorder (!%p139_p2), %s627_s16, 63 }
   0xb   : > { %v733_v0 = vld [vmem:[%s918_s1] sm:$0xff]  ;;  %s922_s16 = smov (!%p163_p3, %s627_s16), 63  ;;  %vm299_vm0 = vcmask 130048   ;;  %vm533_vm1 = vcmask 523264  }
   0xc   : > { %355 = vmatpush.bf16.msra.mxu0 %v733_v0  ;;  %734 = vmatpush.bf16.msra.mxu1 %v733_v0  ;;  %s628_s17 = sshll.u32 %s922_s16, 2  ;;  %v810_v17 = vld [vmem:[%s919_s2] ss:$0 sm:$0xff]  ;;  %s630_s23 = sshll.u32 %s922_s16, 3 }
   0xd   : > { %735 = vmatpush.bf16.msra.mxu2 %v733_v0  ;;  %736 = vmatpush.bf16.msra.mxu3 %v733_v0  ;;  %s166_s20 = scalar_lea.vmem %s917_s0, %s628_s17  ;;  %s818_s26 = scalar_lea.vmem %s920_s3, %s630_s23 }
   0xe   : > { %v717_v1 = vld [vmem:[%s166_s20] sm:$0xff]  ;;  %v718_v5 = vld [vmem:[%s166_s20 + $0x8] sm:$0xff]  ;;  %v719_v9 = vld [vmem:[%s166_s20 + $0x10] sm:$0xff] }
   0xf   : > { %v721_v2 = vld [vmem:[%s166_s20 + $0x20] sm:$0xff]  ;;  %699 = vmatmul.msk.bf16.vlgmr.msra.gmra.mxu0 %vm299_vm0, %v717_v1  ;;  %v722_v6 = vld [vmem:[%s166_s20 + $0x28] sm:$0xff]  ;;  %v723_v10 = vld [vmem:[%s166_s20 + $0x30] sm:$0xff] }
  0x10   : > { %v725_v3 = vld [vmem:[%s166_s20 + $0x40] sm:$0xff]  ;;  %703 = vmatmul.msk.bf16.vlgmr.msra.gmra.mxu1 %vm299_vm0, %v721_v2  ;;  %v726_v7 = vld [vmem:[%s166_s20 + $0x48] sm:$0xff]  ;;  %v727_v11 = vld [vmem:[%s166_s20 + $0x50] sm:$0xff] }
  0x11   : > { %v729_v4 = vld [vmem:[%s166_s20 + $0x60] sm:$0xff]  ;;  %707 = vmatmul.msk.bf16.vlgmr.msra.gmra.mxu2 %vm299_vm0, %v725_v3  ;;  %v730_v8 = vld [vmem:[%s166_s20 + $0x68] sm:$0xff]  ;;  %v731_v12 = vld [vmem:[%s166_s20 + $0x70] sm:$0xff] }
  0x12   : > { %711 = vmatmul.msk.bf16.vlgmr.msra.gmra.mxu3 %vm299_vm0, %v729_v4  ;;  %v720_v13 = vld [vmem:[%s166_s20 + $0x18] sm:$0xff] }
  0x13   : > { %v724_v14 = vld [vmem:[%s166_s20 + $0x38] sm:$0xff] }
  0x14   : > { %v728_v15 = vld [vmem:[%s166_s20 + $0x58] sm:$0xff] }
  0x15   : > { %v732_v16 = vld [vmem:[%s166_s20 + $0x78] sm:$0xff] }
  0x1f   : > { %700 = vmatmul.msk.bf16.gmra.mxu0 %vm299_vm0, %v718_v5 }
  0x20   : > { %704 = vmatmul.msk.bf16.gmra.mxu1 %vm299_vm0, %v722_v6 }
  0x21   : > { %708 = vmatmul.msk.bf16.gmra.mxu2 %vm299_vm0, %v726_v7 }
  0x22   : > { %712 = vmatmul.msk.bf16.gmra.mxu3 %vm299_vm0, %v730_v8 }
  0x2f   : > { %701 = vmatmul.msk.bf16.gmra.mxu0 %vm299_vm0, %v719_v9 }
  0x30   : > { %705 = vmatmul.msk.bf16.gmra.mxu1 %vm299_vm0, %v723_v10 }
  0x31   : > { %709 = vmatmul.msk.bf16.gmra.mxu2 %vm299_vm0, %v727_v11 }
  0x32   : > { %713 = vmatmul.msk.bf16.gmra.mxu3 %vm299_vm0, %v731_v12 }
  0x3f   : > { %702 = vmatmul.msk.bf16.gmra.mxu0 %vm299_vm0, %v720_v13 }
  0x40   : > { %706 = vmatmul.msk.bf16.gmra.mxu1 %vm299_vm0, %v724_v14 }
  0x41   : > { %710 = vmatmul.msk.bf16.gmra.mxu2 %vm299_vm0, %v728_v15 }
  0x42   : > { %714 = vmatmul.msk.bf16.gmra.mxu3 %vm299_vm0, %v732_v16 }
  0x8c   : > { %v357_v18 = vpop.f32.mrf.mxu0 }
  0x8d   : > { %v377_v19 = vpop.f32.mrf.mxu1  ;;  %v358_v20 = vadd.f32 %v810_v17, %v357_v18 }
  0x8e   : > { %v378_v21 = vadd.f32 %v810_v17, %v377_v19 }
  0x8f   : > { %vm437_vm2 = vcmp.ge.f32.partialorder %v358_v20, 0.0  ;;  %v469_v22 = vmul.f32 0.2, %v358_v20 }
  0x90   : > { %vm445_vm3 = vcmp.ge.f32.partialorder %v378_v21, 0.0  ;;  %v477_v23 = vmul.f32 0.2, %v378_v21 }
  0x91   : > { %v501_v24 = vsel %vm437_vm2, %v358_v20, %v469_v22 }
  0x92   : > { %v509_v25 = vsel %vm445_vm3, %v378_v21, %v477_v23  ;;  %534 = vst.msk [vmem:[%s818_s26] sm:$0xff] %vm533_vm1, %v501_v24 }
  0x93   : > { %542 = vst.msk [vmem:[%s818_s26 + $0x40] sm:$0xff] %vm533_vm1, %v509_v25 }
  0x94   : > { %v397_v26 = vpop.f32.mrf.mxu2  ;;  %v359_v30 = vpop.f32.mrf.mxu0 }
  0x95   : > { %v417_v27 = vpop.f32.mrf.mxu3  ;;  %v398_v28 = vadd.f32 %v810_v17, %v397_v26  ;;  %v379_v31 = vpop.f32.mrf.mxu1  ;;  %v360_v32 = vadd.f32 %v810_v17, %v359_v30 }
  0x96   : > { %v418_v29 = vadd.f32 %v810_v17, %v417_v27  ;;  %v380_v33 = vadd.f32 %v810_v17, %v379_v31 }
  0x97   : > { %vm453_vm4 = vcmp.ge.f32.partialorder %v398_v28, 0.0  ;;  %v485_v34 = vmul.f32 0.2, %v398_v28  ;;  %vm438_vm6 = vcmp.ge.f32.partialorder %v360_v32, 0.0  ;;  %v470_v36 = vmul.f32 0.2, %v360_v32 }
  0x98   : > { %vm461_vm5 = vcmp.ge.f32.partialorder %v418_v29, 0.0  ;;  %v493_v35 = vmul.f32 0.2, %v418_v29  ;;  %vm446_vm7 = vcmp.ge.f32.partialorder %v380_v33, 0.0  ;;  %v478_v37 = vmul.f32 0.2, %v380_v33 }
  0x99   : > { %v517_v38 = vsel %vm453_vm4, %v398_v28, %v485_v34  ;;  %v502_v40 = vsel %vm438_vm6, %v360_v32, %v470_v36 }
  0x9a   : > { %v525_v39 = vsel %vm461_vm5, %v418_v29, %v493_v35  ;;  %550 = vst.msk [vmem:[%s818_s26 + $0x80] sm:$0xff] %vm533_vm1, %v517_v38  ;;  %v510_v41 = vsel %vm446_vm7, %v380_v33, %v478_v37 }
  0x9b   : > { %558 = vst.msk [vmem:[%s818_s26 + $0xc0] sm:$0xff] %vm533_vm1, %v525_v39 }
  0x9c   : > { %535 = vst.msk [vmem:[%s818_s26 + $0x8] sm:$0xff] %vm533_vm1, %v502_v40  ;;  %v399_v42 = vpop.f32.mrf.mxu2  ;;  %v362_v46 = vpop.f32.mrf.mxu0 }
  0x9d   : > { %v419_v43 = vpop.f32.mrf.mxu3  ;;  %543 = vst.msk [vmem:[%s818_s26 + $0x48] sm:$0xff] %vm533_vm1, %v510_v41  ;;  %v400_v44 = vadd.f32 %v810_v17, %v399_v42  ;;  %v382_v47 = vpop.f32.mrf.mxu1  ;;  %v363_v48 = vadd.f32 %v810_v17, %v362_v46 }
  0x9e   : > { %v420_v45 = vadd.f32 %v810_v17, %v419_v43  ;;  %v383_v49 = vadd.f32 %v810_v17, %v382_v47 }
  0x9f   : > { %vm454_vm8 = vcmp.ge.f32.partialorder %v400_v44, 0.0  ;;  %v486_v50 = vmul.f32 0.2, %v400_v44  ;;  %vm439_vm10 = vcmp.ge.f32.partialorder %v363_v48, 0.0  ;;  %v471_v52 = vmul.f32 0.2, %v363_v48 }
  0xa0   : > { %vm462_vm9 = vcmp.ge.f32.partialorder %v420_v45, 0.0  ;;  %v494_v51 = vmul.f32 0.2, %v420_v45  ;;  %vm447_vm11 = vcmp.ge.f32.partialorder %v383_v49, 0.0  ;;  %v479_v53 = vmul.f32 0.2, %v383_v49 }
  0xa1   : > { %v518_v54 = vsel %vm454_vm8, %v400_v44, %v486_v50  ;;  %v503_v56 = vsel %vm439_vm10, %v363_v48, %v471_v52 }
  0xa2   : > { %v526_v55 = vsel %vm462_vm9, %v420_v45, %v494_v51  ;;  %551 = vst.msk [vmem:[%s818_s26 + $0x88] sm:$0xff] %vm533_vm1, %v518_v54  ;;  %v511_v57 = vsel %vm447_vm11, %v383_v49, %v479_v53 }
  0xa3   : > { %559 = vst.msk [vmem:[%s818_s26 + $0xc8] sm:$0xff] %vm533_vm1, %v526_v55 }
  0xa4   : > { %536 = vst.msk [vmem:[%s818_s26 + $0x10] sm:$0xff] %vm533_vm1, %v503_v56  ;;  %v402_v58 = vpop.f32.mrf.mxu2  ;;  %v364_v62 = vpop.f32.mrf.mxu0 }
  0xa5   : > { %v422_v59 = vpop.f32.mrf.mxu3  ;;  %544 = vst.msk [vmem:[%s818_s26 + $0x50] sm:$0xff] %vm533_vm1, %v511_v57  ;;  %v403_v60 = vadd.f32 %v810_v17, %v402_v58  ;;  %v384_v63 = vpop.f32.mrf.mxu1  ;;  %v365_v0 = vadd.f32 %v810_v17, %v364_v62 }
  0xa6   : > { %v423_v61 = vadd.f32 %v810_v17, %v422_v59  ;;  %v385_v1 = vadd.f32 %v810_v17, %v384_v63 }
  0xa7   : > { %vm455_vm12 = vcmp.ge.f32.partialorder %v403_v60, 0.0  ;;  %v487_v2 = vmul.f32 0.2, %v403_v60  ;;  %vm440_vm14 = vcmp.ge.f32.partialorder %v365_v0, 0.0  ;;  %v472_v4 = vmul.f32 0.2, %v365_v0 }
  0xa8   : > { %vm463_vm13 = vcmp.ge.f32.partialorder %v423_v61, 0.0  ;;  %v495_v3 = vmul.f32 0.2, %v423_v61  ;;  %vm448_vm15 = vcmp.ge.f32.partialorder %v385_v1, 0.0  ;;  %v480_v5 = vmul.f32 0.2, %v385_v1 }
  0xa9   : > { %v519_v6 = vsel %vm455_vm12, %v403_v60, %v487_v2  ;;  %v504_v8 = vsel %vm440_vm14, %v365_v0, %v472_v4 }
  0xaa   : > { %v527_v7 = vsel %vm463_vm13, %v423_v61, %v495_v3  ;;  %552 = vst.msk [vmem:[%s818_s26 + $0x90] sm:$0xff] %vm533_vm1, %v519_v6  ;;  %v512_v9 = vsel %vm448_vm15, %v385_v1, %v480_v5 }
  0xab   : > { %560 = vst.msk [vmem:[%s818_s26 + $0xd0] sm:$0xff] %vm533_vm1, %v527_v7 }
  0xac   : > { %537 = vst.msk [vmem:[%s818_s26 + $0x18] sm:$0xff] %vm533_vm1, %v504_v8  ;;  %v404_v10 = vpop.f32.mrf.mxu2  ;;  %v367_v14 = vpop.f32.mrf.mxu0 }
  0xad   : > { %v424_v11 = vpop.f32.mrf.mxu3  ;;  %545 = vst.msk [vmem:[%s818_s26 + $0x58] sm:$0xff] %vm533_vm1, %v512_v9  ;;  %v405_v12 = vadd.f32 %v810_v17, %v404_v10  ;;  %v387_v15 = vpop.f32.mrf.mxu1  ;;  %v368_v16 = vadd.f32 %v810_v17, %v367_v14 }
  0xae   : > { %v425_v13 = vadd.f32 %v810_v17, %v424_v11  ;;  %v388_v18 = vadd.f32 %v810_v17, %v387_v15 }
  0xaf   : > { %vm456_vm0 = vcmp.ge.f32.partialorder %v405_v12, 0.0  ;;  %v488_v19 = vmul.f32 0.2, %v405_v12  ;;  %vm441_vm3 = vcmp.ge.f32.partialorder %v368_v16, 0.0  ;;  %v473_v21 = vmul.f32 0.2, %v368_v16 }
  0xb0   : > { %vm464_vm2 = vcmp.ge.f32.partialorder %v425_v13, 0.0  ;;  %v496_v20 = vmul.f32 0.2, %v425_v13  ;;  %vm449_vm4 = vcmp.ge.f32.partialorder %v388_v18, 0.0  ;;  %v481_v22 = vmul.f32 0.2, %v388_v18 }
  0xb1   : > { %v520_v23 = vsel %vm456_vm0, %v405_v12, %v488_v19  ;;  %v505_v25 = vsel %vm441_vm3, %v368_v16, %v473_v21 }
  0xb2   : > { %v528_v24 = vsel %vm464_vm2, %v425_v13, %v496_v20  ;;  %553 = vst.msk [vmem:[%s818_s26 + $0x98] sm:$0xff] %vm533_vm1, %v520_v23  ;;  %v513_v26 = vsel %vm449_vm4, %v388_v18, %v481_v22 }
  0xb3   : > { %561 = vst.msk [vmem:[%s818_s26 + $0xd8] sm:$0xff] %vm533_vm1, %v528_v24 }
  0xb4   : > { %538 = vst.msk [vmem:[%s818_s26 + $0x20] sm:$0xff] %vm533_vm1, %v505_v25  ;;  %v407_v27 = vpop.f32.mrf.mxu2  ;;  %v369_v31 = vpop.f32.mrf.mxu0 }
  0xb5   : > { %v427_v28 = vpop.f32.mrf.mxu3  ;;  %546 = vst.msk [vmem:[%s818_s26 + $0x60] sm:$0xff] %vm533_vm1, %v513_v26  ;;  %v408_v29 = vadd.f32 %v810_v17, %v407_v27  ;;  %v389_v32 = vpop.f32.mrf.mxu1  ;;  %v370_v33 = vadd.f32 %v810_v17, %v369_v31 }
  0xb6   : > { %v428_v30 = vadd.f32 %v810_v17, %v427_v28  ;;  %v390_v34 = vadd.f32 %v810_v17, %v389_v32 }
  0xb7   : > { %vm457_vm5 = vcmp.ge.f32.partialorder %v408_v29, 0.0  ;;  %v489_v35 = vmul.f32 0.2, %v408_v29  ;;  %vm442_vm7 = vcmp.ge.f32.partialorder %v370_v33, 0.0  ;;  %v474_v37 = vmul.f32 0.2, %v370_v33 }
  0xb8   : > { %vm465_vm6 = vcmp.ge.f32.partialorder %v428_v30, 0.0  ;;  %v497_v36 = vmul.f32 0.2, %v428_v30  ;;  %vm450_vm8 = vcmp.ge.f32.partialorder %v390_v34, 0.0  ;;  %v482_v38 = vmul.f32 0.2, %v390_v34 }
  0xb9   : > { %v521_v39 = vsel %vm457_vm5, %v408_v29, %v489_v35  ;;  %v506_v41 = vsel %vm442_vm7, %v370_v33, %v474_v37 }
  0xba   : > { %v529_v40 = vsel %vm465_vm6, %v428_v30, %v497_v36  ;;  %554 = vst.msk [vmem:[%s818_s26 + $0xa0] sm:$0xff] %vm533_vm1, %v521_v39  ;;  %v514_v42 = vsel %vm450_vm8, %v390_v34, %v482_v38 }
  0xbb   : > { %562 = vst.msk [vmem:[%s818_s26 + $0xe0] sm:$0xff] %vm533_vm1, %v529_v40 }
  0xbc   : > { %539 = vst.msk [vmem:[%s818_s26 + $0x28] sm:$0xff] %vm533_vm1, %v506_v41  ;;  %v409_v43 = vpop.f32.mrf.mxu2  ;;  %v372_v47 = vpop.f32.mrf.mxu0 }
  0xbd   : > { %v429_v44 = vpop.f32.mrf.mxu3  ;;  %547 = vst.msk [vmem:[%s818_s26 + $0x68] sm:$0xff] %vm533_vm1, %v514_v42  ;;  %v410_v45 = vadd.f32 %v810_v17, %v409_v43  ;;  %v392_v48 = vpop.f32.mrf.mxu1  ;;  %v373_v49 = vadd.f32 %v810_v17, %v372_v47 }
  0xbe   : > { %v430_v46 = vadd.f32 %v810_v17, %v429_v44  ;;  %v393_v50 = vadd.f32 %v810_v17, %v392_v48 }
  0xbf   : > { %vm458_vm9 = vcmp.ge.f32.partialorder %v410_v45, 0.0  ;;  %v490_v51 = vmul.f32 0.2, %v410_v45  ;;  %vm443_vm11 = vcmp.ge.f32.partialorder %v373_v49, 0.0  ;;  %v475_v53 = vmul.f32 0.2, %v373_v49 }
  0xc0   : > { %vm466_vm10 = vcmp.ge.f32.partialorder %v430_v46, 0.0  ;;  %v498_v52 = vmul.f32 0.2, %v430_v46  ;;  %vm451_vm12 = vcmp.ge.f32.partialorder %v393_v50, 0.0  ;;  %v483_v54 = vmul.f32 0.2, %v393_v50 }
  0xc1   : > { %v522_v55 = vsel %vm458_vm9, %v410_v45, %v490_v51  ;;  %v507_v57 = vsel %vm443_vm11, %v373_v49, %v475_v53 }
  0xc2   : > { %v530_v56 = vsel %vm466_vm10, %v430_v46, %v498_v52  ;;  %555 = vst.msk [vmem:[%s818_s26 + $0xa8] sm:$0xff] %vm533_vm1, %v522_v55  ;;  %v515_v58 = vsel %vm451_vm12, %v393_v50, %v483_v54 }
  0xc3   : > { %563 = vst.msk [vmem:[%s818_s26 + $0xe8] sm:$0xff] %vm533_vm1, %v530_v56 }
  0xc4   : > { %540 = vst.msk [vmem:[%s818_s26 + $0x30] sm:$0xff] %vm533_vm1, %v507_v57  ;;  %v412_v59 = vpop.f32.mrf.mxu2  ;;  %v374_v63 = vpop.f32.mrf.mxu0 }
  0xc5   : > { %v432_v60 = vpop.f32.mrf.mxu3  ;;  %548 = vst.msk [vmem:[%s818_s26 + $0x70] sm:$0xff] %vm533_vm1, %v515_v58  ;;  %v413_v61 = vadd.f32 %v810_v17, %v412_v59  ;;  %v394_v0 = vpop.f32.mrf.mxu1  ;;  %v375_v1 = vadd.f32 %v810_v17, %v374_v63 }
  0xc6   : > { %v433_v62 = vadd.f32 %v810_v17, %v432_v60  ;;  %v395_v2 = vadd.f32 %v810_v17, %v394_v0 }
  0xc7   : > { %vm459_vm13 = vcmp.ge.f32.partialorder %v413_v61, 0.0  ;;  %v491_v3 = vmul.f32 0.2, %v413_v61  ;;  %vm444_vm15 = vcmp.ge.f32.partialorder %v375_v1, 0.0  ;;  %v476_v5 = vmul.f32 0.2, %v375_v1 }
  0xc8   : > { %vm467_vm14 = vcmp.ge.f32.partialorder %v433_v62, 0.0  ;;  %v499_v4 = vmul.f32 0.2, %v433_v62  ;;  %vm452_vm0 = vcmp.ge.f32.partialorder %v395_v2, 0.0  ;;  %v484_v6 = vmul.f32 0.2, %v395_v2 }
  0xc9   : > { %v523_v7 = vsel %vm459_vm13, %v413_v61, %v491_v3  ;;  %v508_v9 = vsel %vm444_vm15, %v375_v1, %v476_v5 }
  0xca   : > { %v531_v8 = vsel %vm467_vm14, %v433_v62, %v499_v4  ;;  %556 = vst.msk [vmem:[%s818_s26 + $0xb0] sm:$0xff] %vm533_vm1, %v523_v7  ;;  %v516_v10 = vsel %vm452_vm0, %v395_v2, %v484_v6 }
  0xcb   : > { %564 = vst.msk [vmem:[%s818_s26 + $0xf0] sm:$0xff] %vm533_vm1, %v531_v8 }
  0xcc   : > { %541 = vst.msk [vmem:[%s818_s26 + $0x38] sm:$0xff] %vm533_vm1, %v508_v9  ;;  %v414_v11 = vpop.f32.mrf.mxu2 }
  0xcd   : > { %v434_v12 = vpop.f32.mrf.mxu3  ;;  %549 = vst.msk [vmem:[%s818_s26 + $0x78] sm:$0xff] %vm533_vm1, %v516_v10  ;;  %v415_v13 = vadd.f32 %v810_v17, %v414_v11 }
  0xce   : > { %v435_v14 = vadd.f32 %v810_v17, %v434_v12 }
  0xcf   : > { %vm460_vm2 = vcmp.ge.f32.partialorder %v415_v13, 0.0  ;;  %v492_v15 = vmul.f32 0.2, %v415_v13 }
  0xd0   : > { %vm468_vm3 = vcmp.ge.f32.partialorder %v435_v14, 0.0  ;;  %v500_v16 = vmul.f32 0.2, %v435_v14 }
  0xd1   : > { %v524_v18 = vsel %vm460_vm2, %v415_v13, %v492_v15 }
  0xd2   : > { %v532_v19 = vsel %vm468_vm3, %v435_v14, %v500_v16  ;;  %557 = vst.msk [vmem:[%s818_s26 + $0xb8] sm:$0xff] %vm533_vm1, %v524_v18 }
  0xd3   : > { %565 = vst.msk [vmem:[%s818_s26 + $0xf8] sm:$0xff] %vm533_vm1, %v532_v19 }
  0xd4 PF: > { %s13_s12 = sadd.s32 1, %s752_s12  }
  0xd5   : > { %p10_p4 = scmp.ge.s32.totalorder %s13_s12, 4  }
  0xd7   :  { %12 = sbr.rel (!%p10_p4) target bundleno = 1 (0x1), region = 62 }

</bundles_post_ra>
